<compile_context>
chip_gen: v5e
topology: v5e:2x2
jax: 0.10.0
libtpu: 0.0.40
codegen_flags: <defaults>
</compile_context>

<pallas_src>
import functools

import jax
import jax.numpy as jnp
from jax.experimental import pallas as pl
from jax.experimental.pallas import tpu as pltpu

_BN_EPS = 1e-5  # PyTorch BatchNorm1d default eps


# ----------------------------------------------------------------------------
# Pallas kernels (one per pipeline stage; batch-tiled grid on axis 0)
# ----------------------------------------------------------------------------
def _stage1_kernel(nin_ref, w1_ref, z_ref, st_ref, *, mxu_dtype):
    """z = net_in @ w1 ; emit per-tile column sum / sum-of-squares for BN stats."""
    z = jnp.dot(nin_ref[...].astype(mxu_dtype), w1_ref[...].astype(mxu_dtype),
                preferred_element_type=jnp.float32)
    z_ref[...] = z
    s = jnp.sum(z, axis=0, keepdims=True)            # (1, h)
    sq = jnp.sum(z * z, axis=0, keepdims=True)       # (1, h)  (one pass over z)
    pad = jnp.zeros((6, z.shape[1]), jnp.float32)
    st_ref[...] = jnp.concatenate([s, sq, pad], axis=0)[None]


def _stage2_kernel(z1_ref, a1_ref, c1_ref, w2_ref, z_ref, st_ref, *, mxu_dtype):
    """h = relu(z1 * a1 + c1)  (BN folded into affine) ; z = h @ w2 ; partial stats."""
    h = jnp.maximum(z1_ref[...] * a1_ref[...] + c1_ref[...], 0.0)
    z = jnp.dot(h.astype(mxu_dtype), w2_ref[...].astype(mxu_dtype),
                preferred_element_type=jnp.float32)
    z_ref[...] = z
    s = jnp.sum(z, axis=0, keepdims=True)
    sq = jnp.sum(z * z, axis=0, keepdims=True)
    pad = jnp.zeros((6, z.shape[1]), jnp.float32)
    st_ref[...] = jnp.concatenate([s, sq, pad], axis=0)[None]


def _stage3_kernel(z2_ref, a2_ref, c2_ref, w3s_ref, w3t_ref, b3s_ref, b3t_ref,
                   sfac_ref, inv_sfac_ref, x1_ref, y1_ref, ldj_ref,
                   *, reverse: bool, mxu_dtype):
    """BN2+ReLU, split linear-3 (scale / shift), coupling transform, log-det."""
    h = jnp.maximum(z2_ref[...] * a2_ref[...] + c2_ref[...], 0.0)
    hb = h.astype(mxu_dtype)
    s_raw = jnp.dot(hb, w3s_ref[...].astype(mxu_dtype),
                    preferred_element_type=jnp.float32) + b3s_ref[...]
    shift = jnp.dot(hb, w3t_ref[...].astype(mxu_dtype),
                    preferred_element_type=jnp.float32) + b3t_ref[...]
    scale = jnp.tanh(s_raw * inv_sfac_ref[...]) * sfac_ref[...]
    ldj_ref[...] = jnp.sum(scale, axis=1, keepdims=True)
    x1 = x1_ref[...]
    if not reverse:
        y1_ref[...] = (x1 - shift) * jnp.exp(-scale)
    else:
        y1_ref[...] = x1 * jnp.exp(scale) + shift


# ----------------------------------------------------------------------------
# Wrapper-side helpers
# ----------------------------------------------------------------------------
def _pick_batch_tile(B):
    # Tile the batch so HBM<->VMEM DMA pipelines against compute and the grid
    # axis can be sharded across TensorCores ("parallel").  Tile kept <= 1024
    # rows so per-tile live state fits comfortably in v7x's 64 MiB VMEM.
    if B <= 1024:
        return B
    for tb in (1024, 512, 256, 128, 64, 32, 16, 8):
        if B % tb == 0:
            return tb
    return B  # fallback: single untiled block


def _fold_bn(stats, B, gamma, beta):
    """Reduce per-tile (sum, sumsq) and fold training-mode BN into h*a + c."""
    s = jnp.sum(stats[:, 0, :], axis=0)                  # (h,)
    sq = jnp.sum(stats[:, 1, :], axis=0)                 # (h,)
    mu = s / B
    var = jnp.maximum(sq / B - mu * mu, 0.0)             # biased variance
    a = gamma * jax.lax.rsqrt(var + _BN_EPS)             # (1, h)
    c = beta - mu * a                                    # (1, h)
    return a, c


# ----------------------------------------------------------------------------
# Python-side module
# ----------------------------------------------------------------------------
class ResNetCouplingLayerPallas:
    """JAX/Pallas port of flow_mpc.flows.coupling.ResNetCouplingLayer."""

    def __init__(self, d, intermediate_dim=128, context_dim=0, swap=False,
                 nonlinearity='ReLu', key=None, mxu_dtype=jnp.float32):
        assert nonlinearity == 'ReLu', "only ReLU variant implemented"
        # TODO(synk): Tanh nonlinearity branch not wired up (trivial swap of jnp.maximum -> jnp.tanh).
        self.d = d - d // 2                    # conditioning split size
        self.out_dim = d // 2                  # transformed split size
        self.swap = swap
        self.context_dim = context_dim
        self.hidden = intermediate_dim
        # Matmul operand dtype: jnp.bfloat16 doubles MXU throughput on v6e/v7x;
        # default f32 keeps exact PyTorch-forward numerics.
        self.mxu_dtype = mxu_dtype
        h = intermediate_dim
        in_dim = self.d + context_dim

        if key is None:
            key = jax.random.PRNGKey(0)
        ks = jax.random.split(key, 3)

        def kaiming(k, fan_in, fan_out, gain):
            # kaiming_normal_: std = gain / sqrt(fan_in)
            return (gain / jnp.sqrt(fan_in)) * jax.random.normal(
                k, (fan_in, fan_out), dtype=jnp.float32)

        relu_gain = jnp.sqrt(2.0)
        # Stored transposed: (in, out) so the kernel does x @ W.
        self.w1 = kaiming(ks[0], in_dim, h, relu_gain)
        # NOTE: linear biases before training-mode BatchNorm cancel exactly
        # (batch-mean subtraction removes any constant column offset), so
        # b1 / b2 are dropped entirely.
        self.g1 = jnp.ones((1, h), jnp.float32)       # BatchNorm1d weight
        self.be1 = jnp.zeros((1, h), jnp.float32)     # BatchNorm1d bias
        self.w2 = kaiming(ks[1], h, h, relu_gain)
        self.g2 = jnp.ones((1, h), jnp.float32)
        self.be2 = jnp.zeros((1, h), jnp.float32)
        w3 = kaiming(ks[2], h, 2 * self.out_dim, 1.0)  # 'linear' gain
        # Split so scale / shift come from two lane-aligned matmuls (no lane slicing).
        self.w3_scale = w3[:, :self.out_dim]
        self.w3_shift = w3[:, self.out_dim:]
        self.b3_scale = jnp.zeros((1, self.out_dim), jnp.float32)
        self.b3_shift = jnp.zeros((1, self.out_dim), jnp.float32)
        self.scaling_factor = jnp.zeros((1, self.out_dim), jnp.float32)

    def __call__(self, x, context=None, logpx=None, reverse=False):
        f32 = jnp.float32
        x = x.astype(f32)
        B, d = x.shape
        if self.swap:
            x = jnp.concatenate([x[:, self.d:], x[:, :self.d]], axis=1)

        # Wrapper-side glue: passthrough half stays out of the kernels entirely.
        x0 = x[:, :self.d]
        x1 = x[:, self.d:]
        net_in = x0 if context is None else \
            jnp.concatenate([x0, context.astype(f32)], axis=1)

        h = self.hidden
        od = self.out_dim
        tb = _pick_batch_tile(B)
        nt = B // tb
        cp = pltpu.CompilerParams(
            dimension_semantics=("parallel",),
            vmem_limit_bytes=32 * 1024 * 1024)

        tiled = lambda width: pl.BlockSpec((tb, width), lambda i: (i, 0))
        const2 = lambda shp: pl.BlockSpec(shp, lambda i: (0, 0))
        stats_spec = pl.BlockSpec((1, 8, h), lambda i: (i, 0, 0))
        mxu = self.mxu_dtype

        # ---- stage 1: linear-1 + partial BN stats -------------------------
        z1, st1 = pl.pallas_call(
            functools.partial(_stage1_kernel, mxu_dtype=mxu),
            grid=(nt,),
            in_specs=[tiled(net_in.shape[1]), const2(self.w1.shape)],
            out_specs=(tiled(h), stats_spec),
            out_shape=(jax.ShapeDtypeStruct((B, h), f32),
                       jax.ShapeDtypeStruct((nt, 8, h), f32)),
            compiler_params=cp,
        )(net_in, self.w1)

        a1, c1 = _fold_bn(st1, B, self.g1, self.be1)

        # ---- stage 2: BN1+ReLU (folded affine) + linear-2 + partial stats --
        z2, st2 = pl.pallas_call(
            functools.partial(_stage2_kernel, mxu_dtype=mxu),
            grid=(nt,),
            in_specs=[tiled(h), const2((1, h)), const2((1, h)), const2((h, h))],
            out_specs=(tiled(h), stats_spec),
            out_shape=(jax.ShapeDtypeStruct((B, h), f32),
                       jax.ShapeDtypeStruct((nt, 8, h), f32)),
            compiler_params=cp,
        )(z1, a1, c1, self.w2)

        a2, c2 = _fold_bn(st2, B, self.g2, self.be2)

        # ---- stage 3: BN2+ReLU + split linear-3 + coupling transform ------
        sfac = jnp.exp(self.scaling_factor)        # hoisted parameter-only math
        inv_sfac = jnp.exp(-self.scaling_factor)
        y1, ldj = pl.pallas_call(
            functools.partial(_stage3_kernel, reverse=reverse, mxu_dtype=mxu),
            grid=(nt,),
            in_specs=[tiled(h), const2((1, h)), const2((1, h)),
                      const2((h, od)), const2((h, od)),
                      const2((1, od)), const2((1, od)),
                      const2((1, od)), const2((1, od)),
                      tiled(od)],
            out_specs=(tiled(od), tiled(1)),
            out_shape=(jax.ShapeDtypeStruct((B, od), f32),
                       jax.ShapeDtypeStruct((B, 1), f32)),
            compiler_params=cp,
        )(z2, a2, c2, self.w3_scale, self.w3_shift,
          self.b3_scale, self.b3_shift, sfac, inv_sfac, x1)

        # ---- wrapper-side concat / swap / logpx accumulation ---------------
        if not self.swap:
            y = jnp.concatenate([x0, y1], axis=1)
        else:
            y = jnp.concatenate([y1, x0], axis=1)

        if logpx is None:
            return y
        logpx = logpx.reshape(B).astype(f32)
        logp = logpx + ldj[:, 0] if reverse else logpx - ldj[:, 0]
        return y, logp


# ----------------------------------------------------------------------------
# Pure-JAX reference (mirrors the PyTorch forward, training-mode BatchNorm)
# ----------------------------------------------------------------------------
def _reference(layer, x, logpx, reverse=False):
    eps = _BN_EPS
    if layer.swap:
        x = jnp.concatenate([x[:, layer.d:], x[:, :layer.d]], axis=1)
    x0 = x[:, :layer.d]
    x1 = x[:, layer.d:]
    h = x0 @ layer.w1
    h = (h - h.mean(0, keepdims=True)) / jnp.sqrt(h.var(0, keepdims=True) + eps)
    h = jnp.maximum(h * layer.g1 + layer.be1, 0.0)
    h = h @ layer.w2
    h = (h - h.mean(0, keepdims=True)) / jnp.sqrt(h.var(0, keepdims=True) + eps)
    h = jnp.maximum(h * layer.g2 + layer.be2, 0.0)
    s_raw = h @ layer.w3_scale + layer.b3_scale
    shift = h @ layer.w3_shift + layer.b3_shift
    s_fac = jnp.exp(layer.scaling_factor)
    scale = jnp.tanh(s_raw / s_fac) * s_fac
    ldj = jnp.sum(scale, axis=1)
    if not reverse:
        y1 = (x1 - shift) * jnp.exp(-scale)
        lp = logpx - ldj
    else:
        y1 = x1 * jnp.exp(scale) + shift
        lp = logpx + ldj
    if not layer.swap:
        y = jnp.concatenate([x0, y1], axis=1)
    else:
        y = jnp.concatenate([y1, x0], axis=1)
    return y, lp


if __name__ == "__main__":
    B, d, hidden = 8, 8, 32
    key = jax.random.PRNGKey(0)
    kx, kl, kp = jax.random.split(key, 3)
    x = jax.random.normal(kx, (B, d), dtype=jnp.float32)
    logpx = jax.random.normal(kl, (B,), dtype=jnp.float32)

    layer = ResNetCouplingLayerPallas(d, intermediate_dim=hidden, key=kp)

    # forward path vs reference
    y, logp = layer(x, logpx=logpx)
    jax.block_until_ready((y, logp))
    y_ref, logp_ref = _reference(layer, x, logpx)
    assert jnp.allclose(y, y_ref, atol=1e-4, rtol=1e-4), "y mismatch"
    assert jnp.allclose(logp, logp_ref, atol=1e-4, rtol=1e-4), "logp mismatch"

    # reverse branch: round-trip recovers x and logpx (conditioning half and
    # hence the BN batch statistics are identical in both directions).
    x_rec, logp_rec = layer(y, logpx=logp, reverse=True)
    jax.block_until_ready((x_rec, logp_rec))
    assert jnp.allclose(x_rec, x, atol=1e-4, rtol=1e-4), "reverse y mismatch"
    assert jnp.allclose(logp_rec, logpx, atol=1e-4, rtol=1e-4), "reverse logp mismatch"

    # swap branch (pure wrapper logic around the same kernels)
    layer_sw = ResNetCouplingLayerPallas(d, intermediate_dim=hidden, swap=True, key=kp)
    y_sw, logp_sw = layer_sw(x, logpx=logpx)
    jax.block_until_ready((y_sw, logp_sw))
    y_sw_ref, logp_sw_ref = _reference(layer_sw, x, logpx)
    assert jnp.allclose(y_sw, y_sw_ref, atol=1e-4, rtol=1e-4), "swap y mismatch"
    assert jnp.allclose(logp_sw, logp_sw_ref, atol=1e-4, rtol=1e-4), "swap logp mismatch"

    # bf16 MXU-operand path (v6e/v7x throughput option) -- loose sanity check.
    layer_bf16 = ResNetCouplingLayerPallas(d, intermediate_dim=hidden, key=kp,
                                           mxu_dtype=jnp.bfloat16)
    y_b, logp_b = layer_bf16(x, logpx=logpx)
    jax.block_until_ready((y_b, logp_b))
    assert bool(jnp.all(jnp.isfinite(y_b))) and bool(jnp.all(jnp.isfinite(logp_b)))
    assert jnp.allclose(y_b, y_ref, atol=0.5, rtol=0.1), "bf16 y diverged"

    print("KERNEL_OK")
</pallas_src>

<mosaic_0001>
module attributes {stable_mosaic.version = 11 : i64} {
  func.func @_stage1_kernel(%arg0: i32, %arg1: memref<8x4xf32, #tpu.memory_space<vmem>>, %arg2: memref<4x32xf32, #tpu.memory_space<vmem>>, %arg3: memref<8x32xf32, #tpu.memory_space<vmem>>, %arg4: memref<1x8x32xf32, #tpu.memory_space<vmem>>) attributes {dimension_semantics = [#tpu.dimension_semantics<parallel>], iteration_bounds = array<i64: 1>, scalar_prefetch = 0 : i64, scratch_operands = 0 : i64, tpu.core_type = #tpu.core_type<tc>, window_params = [{transform_indices = @transform_0, window_bounds = array<i64: 8, 4>}, {pipeline_mode = #tpu.pipeline_mode<synchronous>, transform_indices = @transform_1, window_bounds = array<i64: 4, 32>}, {transform_indices = @transform_2, window_bounds = array<i64: 8, 32>}, {transform_indices = @transform_3, window_bounds = array<i64: 1, 8, 32>}]} {
    %c0 = arith.constant 0 : index
    %c0_0 = arith.constant 0 : index
    %0 = vector.load %arg1[%c0, %c0_0] : memref<8x4xf32, #tpu.memory_space<vmem>>, vector<8x4xf32>
    %c0_1 = arith.constant 0 : index
    %c0_2 = arith.constant 0 : index
    %1 = vector.load %arg2[%c0_1, %c0_2] : memref<4x32xf32, #tpu.memory_space<vmem>>, vector<4x32xf32>
    %cst = arith.constant dense<0.000000e+00> : vector<8x32xf32>
    %2 = tpu.matmul %0, %1, %cst {dimension_numbers = #tpu.dot_dimension_numbers<[1], [0], [0], [1], [0, 0, 1, 1], [], []>} : vector<8x4xf32>, vector<4x32xf32>, vector<8x32xf32> -> vector<8x32xf32>
    %c0_3 = arith.constant 0 : index
    %c0_4 = arith.constant 0 : index
    %3 = vector.load %arg3[%c0_3, %c0_4] : memref<8x32xf32, #tpu.memory_space<vmem>>, vector<8x32xf32>
    tpu.vector_store %arg3[%c0_3, %c0_4], %2 {strides = array<i32>} : memref<8x32xf32, #tpu.memory_space<vmem>>, vector<8x32xf32>,
    %cst_5 = arith.constant dense<0.000000e+00> : vector<32xf32>
    %4 = vector.multi_reduction <add>, %2, %cst_5 [0] : vector<8x32xf32> to vector<32xf32>
    %5 = vector.shape_cast %4 : vector<32xf32> to vector<1x32xf32>
    %6 = arith.mulf %2, %2 : vector<8x32xf32>
    %cst_6 = arith.constant dense<0.000000e+00> : vector<32xf32>
    %7 = vector.multi_reduction <add>, %6, %cst_6 [0] : vector<8x32xf32> to vector<32xf32>
    %8 = vector.shape_cast %7 : vector<32xf32> to vector<1x32xf32>
    %cst_7 = arith.constant 0.000000e+00 : f32
    %9 = vector.broadcast %cst_7 : f32 to vector<6x32xf32>
    %10 = tpu.concatenate %5, %8, %9 in 0 : vector<1x32xf32>, vector<1x32xf32>, vector<6x32xf32> -> vector<8x32xf32>
    %11 = vector.shape_cast %10 : vector<8x32xf32> to vector<1x8x32xf32>
    %c0_8 = arith.constant 0 : index
    %c0_9 = arith.constant 0 : index
    %c0_10 = arith.constant 0 : index
    %12 = vector.load %arg4[%c0_8, %c0_9, %c0_10] : memref<1x8x32xf32, #tpu.memory_space<vmem>>, vector<1x8x32xf32>
    tpu.vector_store %arg4[%c0_8, %c0_9, %c0_10], %11 {strides = array<i32>} : memref<1x8x32xf32, #tpu.memory_space<vmem>>, vector<1x8x32xf32>,
    return
  }
  func.func @transform_0(%arg0: i32) -> (i32, i32) {
    %c0_i32 = arith.constant 0 : i32
    %c0_i32_0 = arith.constant 0 : i32
    return %arg0, %c0_i32 : i32, i32
  }
  func.func @transform_1(%arg0: i32) -> (i32, i32) {
    %c0_i32 = arith.constant 0 : i32
    %c0_i32_0 = arith.constant 0 : i32
    %c0_i32_1 = arith.constant 0 : i32
    return %c0_i32, %c0_i32_0 : i32, i32
  }
  func.func @transform_2(%arg0: i32) -> (i32, i32) {
    %c0_i32 = arith.constant 0 : i32
    %c0_i32_0 = arith.constant 0 : i32
    return %arg0, %c0_i32 : i32, i32
  }
  func.func @transform_3(%arg0: i32) -> (i32, i32, i32) {
    %c0_i32 = arith.constant 0 : i32
    %c0_i32_0 = arith.constant 0 : i32
    %c0_i32_1 = arith.constant 0 : i32
    return %arg0, %c0_i32, %c0_i32_0 : i32, i32, i32
  }
}

</mosaic_0001>

<bundles_post_ra>
// kernel: tpu_custom_call.1
= control target key start
LH: loop header
LB: loop body
LE: loop exit
PB: predicated region body
PF: predicated region fallthrough
CT: control target
= control target key end

     0   :  { %9 = vsyncpa [#allocation3], 0  ;;  %vm21_vm0 = vcmask 1043456   ;;  %vm17_vm1 = vcmask 31744   ;;  %s193_s0 = inlined_call_operand.vmem [shape: f32[8,4], index: 0, kind: input, shape index: {}]   ;;  %s194_s1 = inlined_call_operand.vmem [shape: f32[4,32], index: 1, kind: input, shape index: {}]   ;;  %s195_s2 = inlined_call_operand.hbm [shape: f32[8,32], index: 2, kind: output, shape index: {0}]   ;;  %s196_s3 = inlined_call_operand.hbm [shape: f32[1,8,32], index: 3, kind: output, shape index: {1}]  }
   0x1   :  { %v16_v0 = vld [vmem:[%s194_s1] sm:$0xf] }
   0x2   :  { %v15_v1 = vld [vmem:[%s193_s0] sm:$0xff]  ;;  %99 = vmatpush.msk.msra.mxu0 %vm21_vm0, %v16_v0 }
   0x3   :  { %10 = vsyncpa [#allocation5], 0  ;;  %100 = vmatmul.msk.f32.vlgmr.msra.gmra.mxu0 %vm17_vm1, %v15_v1  ;;  %s155_s16 = smov [#allocation2]   ;;  %s74_s20 = sshll.u32 %s195_s2, 4  ;;  %vm45_vm2 = vcmask 261120   ;;  %vm62_vm3 = vcmask 1040384   ;;  %s75_s20 = int_to_ptr.hbm [resolvable:$true] %s74_s20 }
   0x4   :  { %s72_s17 = sshll.u32 %s155_s16, 4  ;;  %s156_s0 = smov [#allocation4]   ;;  %vm64_vm4 = vcmask 1041408   ;;  %s73_s17 = int_to_ptr.vmem [resolvable:$true] %s72_s17 }
   0x5   :  { %s83_s1 = sshll.u32 %s156_s0, 4  ;;  %s85_s22 = sshll.u32 %s196_s3, 4  ;;  %s84_s1 = int_to_ptr.vmem [resolvable:$true] %s83_s1  ;;  %s86_s22 = int_to_ptr.hbm [resolvable:$true] %s85_s22 }
  0x80   :  { %v42_v2 = vpop.f32.mrf.mxu0 }
  0x81   :  { %v47_v3 = vsel %vm45_vm2, %v42_v2, 0.0  ;;  %v54_v4 = vmul.f32 %v42_v2, %v42_v2  ;;  %46 = vst.msk [vmem:[#allocation2] sm:$0xff] %vm45_vm2, %v42_v2 }
  0x82   :  { %v48_v5 = vrot.slane %v47_v3, 4  ;;  %77 = dma.vmem_to_hbm [thread:$0]  %s73_s17, 128, %s75_s20, [#allocation3]  }
  0x83   :  { %v55_v6 = vsel %vm45_vm2, %v54_v4, 0.0 }
  0x84   :  { %v49_v7 = vadd.f32 %v48_v5, %v47_v3  ;;  %v56_v8 = vrot.slane %v55_v6, 4 }
  0x86   :  { %v50_v9 = vrot.slane %v49_v7, 2  ;;  %v57_v10 = vadd.f32 %v56_v8, %v55_v6 }
  0x88   :  { %v51_v11 = vadd.f32 %v50_v9, %v49_v7  ;;  %v58_v12 = vrot.slane %v57_v10, 2 }
  0x8a   :  { %v52_v13 = vrot.slane %v51_v11, 1  ;;  %v59_v14 = vadd.f32 %v58_v12, %v57_v10 }
  0x8c   :  { %v60_v15 = vrot.slane %v59_v14, 1  ;;  %v53_v16 = vadd.f32 %v52_v13, %v51_v11 }
  0x8e   :  { %v61_v17 = vadd.f32 %v60_v15, %v59_v14 }
  0x90   :  { %v63_v18 = vsel %vm62_vm3, %v53_v16, %v61_v17 }
  0x91   :  { %v65_v19 = vsel %vm64_vm4, %v63_v18, 0.0 }
  0x92   :  { %66 = vst.msk [vmem:[#allocation4] sm:$0xff] %vm45_vm2, %v65_v19 }
  0x93   :  { %88 = dma.vmem_to_hbm [thread:$0]  %s84_s1, 128, %s86_s22, [#allocation5]  }
  0x94   :  { %151 = dma.done.wait [#allocation3], 128  }
  0x95   :  { %152 = vsyncadd [#allocation3], 4294967168 }
  0x96   :  { %153 = dma.done.wait [#allocation5], 128  }
  0x97   :  { %154 = vsyncadd [#allocation5], 4294967168 }
  0x98   :  { %97 = vsyncpa [#allocation3], 1 }
  0x99   :  { %98 = vsyncpa [#allocation5], 1 }

</bundles_post_ra>
